<compile_context>
chip_gen: v6e
topology: v6e:2x2x1
jax: 0.10.0
libtpu: 0.0.40
codegen_flags: <defaults>
</compile_context>

<pallas_src>
import jax
import jax.numpy as jnp
from jax.experimental import pallas as pl
from jax.experimental.pallas import tpu as pltpu


def mlp_kernel(xt_ref, w12t_ref, b12t_ref, w345t_ref, b345t_ref, ot_ref):
    # xt_ref:   (in_dim, TB)   — batch on lanes
    # w12t_ref: (32, in_dim)   b12t_ref: (32, 1)
    # w345t_ref:(out_dim, 32)  b345t_ref:(out_dim, 1)
    xt = xt_ref[...]
    h = jnp.dot(w12t_ref[...], xt, preferred_element_type=jnp.float32) + b12t_ref[...]
    h = jnp.maximum(h, 0.0)
    o = jnp.dot(w345t_ref[...], h, preferred_element_type=jnp.float32) + b345t_ref[...]
    ot_ref[...] = o.astype(ot_ref.dtype)


def mlp_forward(x, params, *, batch_tile=128):
    """x: [B, input_dim] float32. params: list of (W_in_out, b_1_out), 5 layers."""
    B, in_dim = x.shape
    (w1, b1), (w2, b2), (w3, b3), (w4, b4), (w5, b5) = params

    # Fold the activation-free linear chains (exact algebra, done once outside the kernel).
    w12 = w1 @ w2                      # (in_dim, 32)
    b12 = b1 @ w2 + b2                 # (1, 32)
    w345 = w3 @ w4 @ w5                # (32, out_dim)
    b345 = (b3 @ w4 + b4) @ w5 + b5    # (1, out_dim)
    out_dim = w345.shape[1]
    hidden = w12.shape[1]

    # Transposed (lane-dense along batch) operands.
    w12t = w12.T        # (hidden, in_dim)
    b12t = b12.T        # (hidden, 1)
    w345t = w345.T      # (out_dim, hidden)
    b345t = b345.T      # (out_dim, 1)

    # Batch tile: multiple of 128 lanes; pad batch up to a multiple of the tile.
    TB = min(batch_tile, max(128, pl.cdiv(B, 128) * 128))
    Bp = pl.cdiv(B, TB) * TB
    if Bp != B:
        x = jnp.pad(x, ((0, Bp - B), (0, 0)))
    xt = x.T            # (in_dim, Bp)

    grid = (Bp // TB,)
    out_t = pl.pallas_call(
        mlp_kernel,
        out_shape=jax.ShapeDtypeStruct((out_dim, Bp), jnp.float32),
        grid=grid,
        in_specs=[
            pl.BlockSpec((in_dim, TB), lambda i: (0, i)),        # x tile (batch on lanes)
            pl.BlockSpec((hidden, in_dim), lambda i: (0, 0)),    # W12ᵀ  (resident)
            pl.BlockSpec((hidden, 1), lambda i: (0, 0)),         # b12ᵀ
            pl.BlockSpec((out_dim, hidden), lambda i: (0, 0)),   # W345ᵀ
            pl.BlockSpec((out_dim, 1), lambda i: (0, 0)),        # b345ᵀ
        ],
        out_specs=pl.BlockSpec((out_dim, TB), lambda i: (0, i)),
        compiler_params=pltpu.CompilerParams(
            dimension_semantics=("parallel",),
        ),
    )(xt, w12t, b12t, w345t, b345t)

    return out_t[:, :B].T  # back to [B, out_dim]


def init_params(key, input_dim, output_dim):
    dims = [input_dim, 64, 32, 16, 8, output_dim]
    params = []
    for i in range(len(dims) - 1):
        kw, kb, key = jax.random.split(key, 3)
        fan_in, fan_out = dims[i], dims[i + 1]
        bound = 1.0 / jnp.sqrt(fan_in)
        # Stored as (in, out); equivalent to PyTorch's (out, in) weight used as x @ W.T
        w = jax.random.uniform(kw, (fan_in, fan_out), jnp.float32, -bound, bound)
        b = jax.random.uniform(kb, (1, fan_out), jnp.float32, -bound, bound)
        params.append((w, b))
    return params


def reference_forward(x, params):
    h = x @ params[0][0] + params[0][1]
    h = h @ params[1][0] + params[1][1]
    h = jnp.maximum(h, 0.0)
    h = h @ params[2][0] + params[2][1]
    h = h @ params[3][0] + params[3][1]
    h = h @ params[4][0] + params[4][1]
    return h


if __name__ == "__main__":
    key = jax.random.PRNGKey(0)
    kx, kp = jax.random.split(key)

    input_dim = 8    # California housing has 8 features
    output_dim = 1   # regression target
    batch = 128

    x = jax.random.normal(kx, (batch, input_dim), dtype=jnp.float32)
    params = init_params(kp, input_dim, output_dim)

    out = mlp_forward(x, params)
    out = jax.block_until_ready(out)

    ref = reference_forward(x, params)
    assert out.shape == (batch, output_dim)
    assert jnp.allclose(out, ref, atol=1e-4, rtol=1e-4), "mismatch vs reference"

    print("KERNEL_OK")
</pallas_src>

<mosaic_0001>
module attributes {stable_mosaic.version = 11 : i64} {
  func.func @mlp_kernel(%arg0: i32, %arg1: memref<8x128xf32, #tpu.memory_space<vmem>>, %arg2: memref<32x8xf32, #tpu.memory_space<vmem>>, %arg3: memref<32x1xf32, #tpu.memory_space<vmem>>, %arg4: memref<1x32xf32, #tpu.memory_space<vmem>>, %arg5: memref<1x1xf32, #tpu.memory_space<vmem>>, %arg6: memref<1x128xf32, #tpu.memory_space<vmem>>) attributes {dimension_semantics = [#tpu.dimension_semantics<parallel>], iteration_bounds = array<i64: 1>, scalar_prefetch = 0 : i64, scratch_operands = 0 : i64, tpu.core_type = #tpu.core_type<tc>, window_params = [{transform_indices = @transform_0, window_bounds = array<i64: 8, 128>}, {pipeline_mode = #tpu.pipeline_mode<synchronous>, transform_indices = @transform_1, window_bounds = array<i64: 32, 8>}, {pipeline_mode = #tpu.pipeline_mode<synchronous>, transform_indices = @transform_2, window_bounds = array<i64: 32, 1>}, {pipeline_mode = #tpu.pipeline_mode<synchronous>, transform_indices = @transform_3, window_bounds = array<i64: 1, 32>}, {pipeline_mode = #tpu.pipeline_mode<synchronous>, transform_indices = @transform_4, window_bounds = array<i64: 1, 1>}, {transform_indices = @transform_5, window_bounds = array<i64: 1, 128>}]} {
    %c0 = arith.constant 0 : index
    %c0_0 = arith.constant 0 : index
    %0 = vector.load %arg1[%c0, %c0_0] : memref<8x128xf32, #tpu.memory_space<vmem>>, vector<8x128xf32>
    %c0_1 = arith.constant 0 : index
    %c0_2 = arith.constant 0 : index
    %1 = vector.load %arg2[%c0_1, %c0_2] : memref<32x8xf32, #tpu.memory_space<vmem>>, vector<32x8xf32>
    %cst = arith.constant dense<0.000000e+00> : vector<32x128xf32>
    %2 = tpu.matmul %1, %0, %cst {dimension_numbers = #tpu.dot_dimension_numbers<[1], [0], [0], [1], [0, 0, 1, 1], [], []>} : vector<32x8xf32>, vector<8x128xf32>, vector<32x128xf32> -> vector<32x128xf32>
    %c0_3 = arith.constant 0 : index
    %c0_4 = arith.constant 0 : index
    %3 = vector.load %arg3[%c0_3, %c0_4] : memref<32x1xf32, #tpu.memory_space<vmem>>, vector<32x1xf32>
    %4 = vector.broadcast %3 : vector<32x1xf32> to vector<32x128xf32>
    %5 = arith.addf %2, %4 : vector<32x128xf32>
    %cst_5 = arith.constant 0.000000e+00 : f32
    %6 = vector.broadcast %cst_5 : f32 to vector<32x128xf32>
    %7 = arith.maximumf %5, %6 : vector<32x128xf32>
    %c0_6 = arith.constant 0 : index
    %c0_7 = arith.constant 0 : index
    %8 = vector.load %arg4[%c0_6, %c0_7] : memref<1x32xf32, #tpu.memory_space<vmem>>, vector<1x32xf32>
    %cst_8 = arith.constant dense<0.000000e+00> : vector<1x128xf32>
    %9 = tpu.matmul %8, %7, %cst_8 {dimension_numbers = #tpu.dot_dimension_numbers<[1], [0], [0], [1], [0, 0, 1, 1], [], []>} : vector<1x32xf32>, vector<32x128xf32>, vector<1x128xf32> -> vector<1x128xf32>
    %c0_9 = arith.constant 0 : index
    %c0_10 = arith.constant 0 : index
    %10 = vector.load %arg5[%c0_9, %c0_10] : memref<1x1xf32, #tpu.memory_space<vmem>>, vector<1x1xf32>
    %11 = vector.broadcast %10 : vector<1x1xf32> to vector<1x128xf32>
    %12 = arith.addf %9, %11 : vector<1x128xf32>
    %c0_11 = arith.constant 0 : index
    %c0_12 = arith.constant 0 : index
    %13 = vector.load %arg6[%c0_11, %c0_12] : memref<1x128xf32, #tpu.memory_space<vmem>>, vector<1x128xf32>
    tpu.vector_store %arg6[%c0_11, %c0_12], %12 {strides = array<i32>} : memref<1x128xf32, #tpu.memory_space<vmem>>, vector<1x128xf32>,
    return
  }
  func.func @transform_0(%arg0: i32) -> (i32, i32) {
    %c0_i32 = arith.constant 0 : i32
    %c0_i32_0 = arith.constant 0 : i32
    return %c0_i32, %arg0 : i32, i32
  }
  func.func @transform_1(%arg0: i32) -> (i32, i32) {
    %c0_i32 = arith.constant 0 : i32
    %c0_i32_0 = arith.constant 0 : i32
    %c0_i32_1 = arith.constant 0 : i32
    return %c0_i32, %c0_i32_0 : i32, i32
  }
  func.func @transform_2(%arg0: i32) -> (i32, i32) {
    %c0_i32 = arith.constant 0 : i32
    %c0_i32_0 = arith.constant 0 : i32
    %c0_i32_1 = arith.constant 0 : i32
    return %c0_i32, %c0_i32_0 : i32, i32
  }
  func.func @transform_3(%arg0: i32) -> (i32, i32) {
    %c0_i32 = arith.constant 0 : i32
    %c0_i32_0 = arith.constant 0 : i32
    %c0_i32_1 = arith.constant 0 : i32
    return %c0_i32, %c0_i32_0 : i32, i32
  }
  func.func @transform_4(%arg0: i32) -> (i32, i32) {
    %c0_i32 = arith.constant 0 : i32
    %c0_i32_0 = arith.constant 0 : i32
    %c0_i32_1 = arith.constant 0 : i32
    return %c0_i32, %c0_i32_0 : i32, i32
  }
  func.func @transform_5(%arg0: i32) -> (i32, i32) {
    %c0_i32 = arith.constant 0 : i32
    %c0_i32_0 = arith.constant 0 : i32
    return %c0_i32, %arg0 : i32, i32
  }
}

</mosaic_0001>

<bundles_post_ra>
// kernel: tpu_custom_call.1
= control target key start
LH: loop header
LB: loop body
LE: loop exit
PB: predicated region body
PF: predicated region fallthrough
CT: control target
= control target key end

     0   :  { %s390_s0 = inlined_call_operand.vmem [shape: f32[8,128], index: 0, kind: input, shape index: {}]   ;;  %s391_s1 = inlined_call_operand.vmem [shape: f32[32,8], index: 1, kind: input, shape index: {}]   ;;  %s392_s2 = inlined_call_operand.vmem [shape: f32[32,1], index: 2, kind: input, shape index: {}]   ;;  %s393_s3 = inlined_call_operand.vmem [shape: f32[1,32], index: 3, kind: input, shape index: {}]   ;;  %s394_s4 = inlined_call_operand.<no memory space> [shape: f32[1,1], index: 4, kind: input, shape index: {}]   ;;  %s395_s5 = inlined_call_operand.hbm [shape: f32[1,128], index: 5, kind: output, shape index: {}]  }
   0x1   :  { %v10_v0 = vstv %s394_s4 }
   0x2   :  { %11 = vst [vmem:[#allocation2] sm:$0x1] %v10_v0 }
   0x3   :  { %v23_v1 = vld [vmem:[%s390_s0] sm:$0xff]  ;;  %vm52_vm0 = vcmask 64512   ;;  %v25_v3 = vld [vmem:[%s391_s1 + $0x8] sm:$0xff]  ;;  %v26_v4 = vld [vmem:[%s391_s1 + $0x10] sm:$0xff]  ;;  %v316_v6 = vmov 0  }
   0x4   :  { %v24_v2 = vld [vmem:[%s391_s1] sm:$0xff]  ;;  %269 = vmatprep.subr.mxu0 %v23_v1  ;;  %v31_v5 = vld [vmem:[%s392_s2 + $0x18] sm:$0xff]  ;;  %292 = vset.pattern.permute.xlu0 %v316_v6  ;;  %v29_v7 = vld [vmem:[%s392_s2 + $0x8] sm:$0xff] }
   0x5   :  { %271 = vmatprep.mubr.msk.f32.mxu0 %vm52_vm0, %v24_v2  ;;  %270 = vmatpush3.msra.mxu0 %v23_v1 }
   0x6   :  { %272 = vmatmul.mubr.msk.f32.vlgmr.msra.gmra.mxu0 %vm52_vm0, %v25_v3  ;;  %49 = vperm.xlu0 %292, %v31_v5  }
   0x7   :  { %12 = vsyncpa [#allocation4], 0  ;;  %274 = vmatprep.mubr.msk.f32.mxu0 %vm52_vm0, %v26_v4  ;;  %v27_v8 = vld [vmem:[%s391_s1 + $0x18] sm:$0xff]  ;;  %293 = vset.pattern.permute.xlu1 %v316_v6  ;;  %v30_v9 = vld [vmem:[%s392_s2 + $0x10] sm:$0xff]  ;;  %v317_v12 = vmov 0.0   ;;  %vm318_vm1 = vmmov 0   ;;  %v161_v30 = vlaneseq }
   0x8   :  { %39 = vperm.xlu1 %293, %v29_v7   ;;  %v28_v10 = vld [vmem:[%s392_s2] sm:$0xff]  ;;  %277 = vmatprep.subr.mxu1 %v317_v12  ;;  %vm165_vm2 = vcmask 261120   ;;  %s319_s11 = smov [#allocation3]  }
   0x9   :  { %v155_v11 = vld [vmem:[#allocation2] sm:$0x1]  ;;  %285 = vmatprep.mubr.msk.f32.mxu1 %vm318_vm1, %v317_v12  ;;  %v162_v31 = vshrl.u32 %v161_v30, 7  ;;  %s246_s12 = sshll.u32 %s319_s11, 4  ;;  %s247_s12 = int_to_ptr.vmem [resolvable:$true] %s246_s12 }
   0xa   :  { %275 = vmatmul.mubr.msk.f32.gmra.mxu0 %vm52_vm0, %v27_v8  ;;  %44 = vperm.xlu0 %292, %v30_v9   ;;  %v154_v29 = vld [vmem:[%s393_s3] sm:$0x1]  ;;  %s294_s13 = scalar_lea.vmem %s247_s12, 16  ;;  %s298_s14 = scalar_lea.vmem %s247_s12, 32 }
   0xb   :  { %v163_v32 = vsub.s32 0, %v162_v31  ;;  %p295_p0 = scmp.ne.s32.totalorder %s247_s12, %s294_s13  ;;  %p299_p1 = scmp.lt.s32.totalorder %s247_s12, %s247_s12 }
   0xc   :  { %34 = vperm.xlu1 %293, %v28_v10   ;;  %p300_p2 = scmp.lt.s32.totalorder %s298_s14, %s294_s13 }
   0xe   :  { %158 = vperm.xlu0 %292, %v155_v11   ;;  %p301_p3 = por %p300_p2, %p299_p1 }
  0x10   :  { %p302_p4 = pnand %p301_p3, %p295_p0 }
  0x81   :  { %v50_v13 = vpop.permute.xlu0 %49 }
  0x83   :  { %v40_v14 = vpop.permute.xlu1 %39 }
  0x85   :  { %v45_v18 = vpop.permute.xlu0 %44 }
  0x87   :  { %v35_v20 = vpop.permute.xlu1 %34 }
  0x89   :  { %v159_v33 = vpop.permute.xlu0 %158 }
  0x8a   :  { %v164_v34 = vrot.slane %v159_v33, %v163_v32 }
  0xc6   :  { %v273_v15 = vpop.f32.mrf.mxu0 }
  0xc7   :  { %v137_v22 = vadd.f32 %v273_v15, %v40_v14 }
  0xc8   :  { %v131_v16 = vpop.f32.mrf.mxu0 }
  0xc9   :  { %v132_v25 = vadd.f32 %v131_v16, %v35_v20  ;;  %v151_v27 = vmax.f32 %v137_v22, 0.0 }
  0xca   :  { %v276_v17 = vpop.f32.mrf.mxu0 }
  0xcb   :  { %v147_v19 = vadd.f32 %v276_v17, %v50_v13  ;;  %v150_v28 = vmax.f32 %v132_v25, 0.0 }
  0xcc   :  { %v141_v21 = vpop.f32.mrf.mxu0 }
  0xcd   :  { %v153_v23 = vmax.f32 %v147_v19, 0.0  ;;  %v142_v24 = vadd.f32 %v141_v21, %v45_v18 }
  0xcf   :  { %v152_v26 = vmax.f32 %v142_v24, 0.0  ;;  %278 = vmatpush3.msra.mxu1 %v153_v23 }
  0xd0   :  { %279 = vmatprep.subr.mxu1 %v317_v12 }
  0xd1   :  { %280 = vmatpush3.msra.mxu1 %v152_v26 }
  0xd2   :  { %281 = vmatprep.subr.mxu1 %v317_v12 }
  0xd3   :  { %282 = vmatpush3.msra.mxu1 %v151_v27 }
  0xd4   :  { %283 = vmatprep.subr.mxu1 %v317_v12 }
  0xd5   :  { %284 = vmatpush3.msra.mxu1 %v150_v28 }
  0xd6   :  { %286 = vmatmul.mubr.msk.f32.vlgmr.msra.gmra.mxu1 %vm165_vm2, %v154_v29 }
 0x196   :  { %v235_v35 = vpop.f32.mrf.mxu1 }
 0x197   :  { %v236_v36 = vadd.f32 %v235_v35, %v164_v34 }
 0x198   :  { %v287_v37 = vpop.f32.mrf.mxu1 }
 0x199   :  { %239 = vst [vmem:[#allocation3] sm:$0x1] %v236_v36 }
 0x19a   :  { %305 = shalt.err (!%p302_p4)
}
 0x19b   :  { %249 = dma.vmem_to_hbm [thread:$0]  %s247_s12, 16, %s395_s5, [#allocation4]  }
 0x19c   :  { %314 = dma.done.wait [#allocation4], 16  }
 0x19d   :  { %315 = vsyncadd [#allocation4], 4294967280 }
 0x19e   :  { %253 = vsyncpa [#allocation4], 1 }

</bundles_post_ra>
